<compile_context>
chip_gen: v7x
topology: tpu7x:2x2x1
jax: 0.10.0
libtpu: 0.0.40
codegen_flags: <defaults>
</compile_context>

<pallas_src>
import functools
import numpy as np

import jax
import jax.numpy as jnp
from jax.experimental import pallas as pl
from jax.experimental.pallas import tpu as pltpu


# ----------------------------------------------------------------------------
# Generation-aware VMEM budgeting + lane-tile picker.
# ----------------------------------------------------------------------------
def _detect_vmem_limit():
    """Scoped-VMEM limit with headroom: ~3/4 of physical, capped at 64 MiB.
    v7x (64 MiB VMEM) -> 48 MiB; v5e/v6e (128 MiB) -> 64 MiB."""
    try:
        cap = int(pltpu.get_tpu_info().vmem_capacity_bytes)
    except Exception:
        cap = 128 * 1024 * 1024
    return int(min(64 * 1024 * 1024, (cap * 3) // 4))


_VMEM_LIMIT = _detect_vmem_limit()


def _pick_d_tile(D, rows_per_step, vmem_limit, max_tile=2048):
    """Largest lane tile (multiple of 128 dividing D, <= max_tile) whose
    double-buffered per-step f32 working set (`rows_per_step` rows x td lanes)
    fits in half the scoped VMEM limit (rest is headroom for resident operands
    and compiler scratch).  Falls back to the full extent if D % 128 != 0."""
    if D % 128 != 0:
        return D                               # full-extent block is always legal
    budget = vmem_limit // 2
    best = 128
    td = 128
    while td <= min(D, max_tile):
        if D % td == 0 and 2 * rows_per_step * td * 4 <= budget:
            best = td
        td *= 2
    return best


def _pow_momentum(momentum, t):
    """momentum**t elementwise, exact for momentum == 0 (0**0 == 1)."""
    if momentum == 0.0:
        return (t < 0.5).astype(jnp.float32)
    return jnp.exp(t.astype(jnp.float32) * np.float32(np.log(momentum)))


# ----------------------------------------------------------------------------
# Kernel 1 (proc): per D-tile ordered-EMA scatter as a single MXU matmul + FMA.
# Ref shapes: w (C,B)  decay (C,1)  feat (B,td)  bank (C,td) -> bank_out (C,td)
# ----------------------------------------------------------------------------
def _proc_bank_kernel(w_ref, decay_ref, feat_ref, bank_ref, bank_out_ref,
                      *, one_minus_m):
    delta = jnp.dot(w_ref[...], feat_ref[...],
                    preferred_element_type=jnp.float32)            # (C, td)
    bank_out_ref[...] = (decay_ref[...] * bank_ref[...]
                         + jnp.float32(one_minus_m) * delta)


@functools.partial(jax.jit,
                   static_argnames=("momentum", "choose", "d_tile"),
                   donate_argnames=("upd_bank",))
def proc_call(scores, labels, feat, upd_bank, upd_times, *,
              momentum, choose, d_tile=None):
    if choose not in ("all", "correct", "err"):
        raise ValueError(f"unknown choose={choose!r}")
    B, C_sc = scores.shape
    C, D = upd_bank.shape
    assert C_sc == C, "scores class dim must match bank rows"

    # ---------------- D-invariant prep (O(B*C), fused by XLA) ----------------
    # softmax is strictly monotone per row -> argmax of raw scores is identical.
    pred = jnp.argmax(scores.astype(jnp.float32), axis=1).astype(jnp.int32)  # (B,)
    labels_i = labels.astype(jnp.int32)                                      # (B,)

    if choose == "all":
        sel = jnp.ones((B,), jnp.float32)
    elif choose == "correct":
        sel = (pred == labels_i).astype(jnp.float32)
    else:  # "err"
        sel = (pred != labels_i).astype(jnp.float32)

    classes = jnp.arange(C, dtype=jnp.int32)[:, None]                        # (C,1)
    S = (labels_i[None, :] == classes).astype(jnp.float32) * sel[None, :]    # (C,B)
    n = jnp.sum(S, axis=1, keepdims=True)                                    # (C,1)
    # r[c,i] = # selected samples of class c strictly AFTER i (suffix count).
    r = n - jnp.cumsum(S, axis=1)                                            # (C,B)
    w = S * _pow_momentum(momentum, r)                                       # (C,B)
    decay = _pow_momentum(momentum, n)                                       # (C,1)
    new_times = upd_times.astype(jnp.float32) + n[:, 0]                      # (C,)

    # ---------------- D-tiled Pallas kernel ----------------
    upd_bank = upd_bank.astype(jnp.float32)      # no-op for f32; keeps alias legal
    feat = feat.astype(jnp.float32)

    if d_tile is None:
        td = _pick_d_tile(D, rows_per_step=B + 2 * C, vmem_limit=_VMEM_LIMIT)
    else:
        assert D % d_tile == 0
        td = d_tile
    nd = D // td

    kernel = functools.partial(_proc_bank_kernel,
                               one_minus_m=float(1.0 - momentum))
    new_bank = pl.pallas_call(
        kernel,
        out_shape=jax.ShapeDtypeStruct((C, D), jnp.float32),
        grid=(nd,),
        in_specs=[
            pl.BlockSpec((C, B), lambda d: (0, 0)),      # w      (resident)
            pl.BlockSpec((C, 1), lambda d: (0, 0)),      # decay  (resident)
            pl.BlockSpec((B, td), lambda d: (0, d)),     # feat tile
            pl.BlockSpec((C, td), lambda d: (0, d)),     # bank tile (aliased)
        ],
        out_specs=pl.BlockSpec((C, td), lambda d: (0, d)),
        input_output_aliases={3: 0},                     # bank updated in place
        compiler_params=pltpu.CompilerParams(
            dimension_semantics=("parallel",),           # no revisited outputs
            vmem_limit_bytes=_VMEM_LIMIT),
    )(w, decay, feat, upd_bank)
    return new_bank, new_times


# ----------------------------------------------------------------------------
# Kernel 2 (update_bank, fused with zeroing of update_feat_bank):
#   feat_bank = momentum**times[:,None] * feat_bank + (1-momentum)*update_bank
#   update_bank = 0
# ----------------------------------------------------------------------------
def _update_bank_kernel(feat_bank_ref, upd_bank_ref, decay_ref,
                        fb_out_ref, upd_out_ref, *, one_minus_m):
    fb_out_ref[...] = (decay_ref[...] * feat_bank_ref[...]
                       + jnp.float32(one_minus_m) * upd_bank_ref[...])
    upd_out_ref[...] = jnp.zeros_like(upd_out_ref)


@functools.partial(jax.jit,
                   static_argnames=("momentum", "d_tile"),
                   donate_argnames=("feat_bank", "upd_bank"))
def update_bank_call(feat_bank, upd_bank, upd_times, *, momentum, d_tile=None):
    C, D = feat_bank.shape
    decay = _pow_momentum(momentum, upd_times.astype(jnp.float32)).reshape(C, 1)

    feat_bank = feat_bank.astype(jnp.float32)
    upd_bank = upd_bank.astype(jnp.float32)

    if d_tile is None:
        td = _pick_d_tile(D, rows_per_step=4 * C, vmem_limit=_VMEM_LIMIT)
    else:
        assert D % d_tile == 0
        td = d_tile
    nd = D // td

    kernel = functools.partial(_update_bank_kernel,
                               one_minus_m=float(1.0 - momentum))
    new_fb, new_upd = pl.pallas_call(
        kernel,
        out_shape=(jax.ShapeDtypeStruct((C, D), jnp.float32),
                   jax.ShapeDtypeStruct((C, D), jnp.float32)),
        grid=(nd,),
        in_specs=[pl.BlockSpec((C, td), lambda d: (0, d)),   # feat_bank tile
                  pl.BlockSpec((C, td), lambda d: (0, d)),   # update bank tile
                  pl.BlockSpec((C, 1), lambda d: (0, 0))],   # decay (resident)
        out_specs=(pl.BlockSpec((C, td), lambda d: (0, d)),
                   pl.BlockSpec((C, td), lambda d: (0, d))),
        input_output_aliases={0: 0, 1: 1},                   # both in place
        compiler_params=pltpu.CompilerParams(
            dimension_semantics=("parallel",),               # megacore on v7x
            vmem_limit_bytes=_VMEM_LIMIT),
    )(feat_bank, upd_bank, decay)
    return new_fb, new_upd


# ----------------------------------------------------------------------------
# AvgMem module (JAX / Pallas)
# ----------------------------------------------------------------------------
class AvgMemPallas:
    def __init__(self, num_classes, bank_dim, momentum, choose):
        self.num_classes = num_classes
        self.dim = bank_dim
        self.choose = choose
        self.momentum = float(momentum)
        self.feat_bank = jnp.zeros((num_classes, bank_dim), jnp.float32)
        self.bank_confidence = jnp.zeros((num_classes,), jnp.float32)
        self.update_feat_bank = jnp.zeros((num_classes, bank_dim), jnp.float32)
        self.update_times = jnp.zeros((num_classes,), jnp.float32)

    def forward(self):
        # torch forward() is `pass`
        return None

    def return_bank_feat(self):
        return self.feat_bank

    def proc(self, scores, labels, feat):
        # self.update_feat_bank is donated -> true in-place bank update.
        new_bank, new_times = proc_call(
            scores, labels, feat, self.update_feat_bank, self.update_times,
            momentum=self.momentum, choose=self.choose)
        self.update_feat_bank = new_bank
        self.update_times = new_times

    def update_bank(self):
        # both banks donated -> aliased in-place update + reset.
        self.feat_bank, self.update_feat_bank = update_bank_call(
            self.feat_bank, self.update_feat_bank, self.update_times,
            momentum=self.momentum)
        self.update_times = jnp.zeros_like(self.update_times)


# ----------------------------------------------------------------------------
# Pure numpy reference (mirrors the torch code) for correctness checking.
# ----------------------------------------------------------------------------
def ref_proc(scores, labels, feat, upd_bank, upd_times, momentum, choose):
    scores = np.asarray(scores, np.float64)
    e = np.exp(scores - scores.max(1, keepdims=True))
    p = e / e.sum(1, keepdims=True)
    pred = p.argmax(1)
    upd_bank = np.array(upd_bank, np.float64)
    upd_times = np.array(upd_times, np.float64)
    for i in range(len(labels)):
        if choose == "all":
            sel = True
        elif choose == "correct":
            sel = pred[i] == labels[i]
        else:
            sel = pred[i] != labels[i]
        if sel:
            l = int(labels[i])
            upd_bank[l] = momentum * upd_bank[l] + (1 - momentum) * np.asarray(feat[i], np.float64)
            upd_times[l] += 1.0
    return upd_bank, upd_times


def ref_update_bank(feat_bank, upd_bank, upd_times, momentum):
    feat_bank = np.asarray(feat_bank, np.float64)
    return (momentum ** np.asarray(upd_times, np.float64))[:, None] * feat_bank \
        + (1 - momentum) * np.asarray(upd_bank, np.float64)


if __name__ == "__main__":
    B, C, D = 8, 8, 128          # batch, num_classes, bank_dim
    momentum = 0.9

    key = jax.random.PRNGKey(0)
    k1, k2, k3, k4, k5 = jax.random.split(key, 5)
    scores1 = jax.random.normal(k1, (B, C), jnp.float32)
    labels1 = jax.random.randint(k2, (B,), 0, C, jnp.int32)
    feat1 = jax.random.normal(k3, (B, D), jnp.float32)
    scores2 = jax.random.normal(k4, (B, C), jnp.float32)
    labels2 = labels1                      # reuse to exercise repeated-class EMA
    feat2 = jax.random.normal(k5, (B, D), jnp.float32)

    for choose in ("correct", "err", "all"):
        mem = AvgMemPallas(C, D, momentum, choose)
        mem.forward()                      # no-op, matches torch forward()
        mem.proc(scores1, labels1, feat1)
        mem.proc(scores2, labels2, feat2)
        mem.update_bank()
        bank = jax.block_until_ready(mem.return_bank_feat())

        # reference
        rb = np.zeros((C, D)); rt = np.zeros((C,)); rfb = np.zeros((C, D))
        rb, rt = ref_proc(np.array(scores1), np.array(labels1), np.array(feat1),
                          rb, rt, momentum, choose)
        rb, rt = ref_proc(np.array(scores2), np.array(labels2), np.array(feat2),
                          rb, rt, momentum, choose)
        rfb = ref_update_bank(rfb, rb, rt, momentum)

        assert np.allclose(np.array(bank), rfb, atol=1e-5, rtol=1e-5), \
            f"bank mismatch vs reference (choose={choose})"
        assert np.allclose(np.array(mem.update_feat_bank), 0.0), "update bank not reset"
        assert np.allclose(np.array(mem.update_times), 0.0), "update times not reset"

    # --- extra check: exercise a multi-tile D grid (nd > 1) explicitly ------
    D2 = 512
    feat_a = jax.random.normal(k3, (B, D2), jnp.float32)
    nb, nt = proc_call(scores1, labels1, feat_a,
                       jnp.zeros((C, D2), jnp.float32),
                       jnp.zeros((C,), jnp.float32),
                       momentum=momentum, choose="all", d_tile=128)
    nb_host = np.array(nb)                          # copy out before donation
    nt_host = np.array(nt)
    fb1, upd_reset = update_bank_call(jnp.zeros((C, D2), jnp.float32), nb, nt,
                                      momentum=momentum, d_tile=128)
    fb1 = jax.block_until_ready(fb1)

    rb2, rt2 = ref_proc(np.array(scores1), np.array(labels1), np.array(feat_a),
                        np.zeros((C, D2)), np.zeros((C,)), momentum, "all")
    rfb2 = ref_update_bank(np.zeros((C, D2)), rb2, rt2, momentum)
    assert np.allclose(nb_host, rb2, atol=1e-5, rtol=1e-5), "tiled proc mismatch"
    assert np.allclose(nt_host, rt2, atol=1e-5, rtol=1e-5), "tiled times mismatch"
    assert np.allclose(np.array(fb1), rfb2, atol=1e-5, rtol=1e-5), "tiled update_bank mismatch"
    assert np.allclose(np.array(upd_reset), 0.0), "tiled update bank not reset"

    print("KERNEL_OK")
</pallas_src>

<mosaic_0001>
module attributes {stable_mosaic.version = 11 : i64} {
  func.func @_proc_bank_kernel(%arg0: i32, %arg1: memref<8x8xf32, #tpu.memory_space<vmem>>, %arg2: memref<8x1xf32, #tpu.memory_space<vmem>>, %arg3: memref<8x128xf32, #tpu.memory_space<vmem>>, %arg4: memref<8x128xf32, #tpu.memory_space<vmem>>, %arg5: memref<8x128xf32, #tpu.memory_space<vmem>>) attributes {dimension_semantics = [#tpu.dimension_semantics<parallel>], iteration_bounds = array<i64: 1>, scalar_prefetch = 0 : i64, scratch_operands = 0 : i64, tpu.core_type = #tpu.core_type<tc>, window_params = [{pipeline_mode = #tpu.pipeline_mode<synchronous>, transform_indices = @transform_0, window_bounds = array<i64: 8, 8>}, {pipeline_mode = #tpu.pipeline_mode<synchronous>, transform_indices = @transform_1, window_bounds = array<i64: 8, 1>}, {transform_indices = @transform_2, window_bounds = array<i64: 8, 128>}, {transform_indices = @transform_3, window_bounds = array<i64: 8, 128>}, {transform_indices = @transform_4, window_bounds = array<i64: 8, 128>}]} {
    %c0 = arith.constant 0 : index
    %c0_0 = arith.constant 0 : index
    %0 = vector.load %arg1[%c0, %c0_0] : memref<8x8xf32, #tpu.memory_space<vmem>>, vector<8x8xf32>
    %c0_1 = arith.constant 0 : index
    %c0_2 = arith.constant 0 : index
    %1 = vector.load %arg3[%c0_1, %c0_2] : memref<8x128xf32, #tpu.memory_space<vmem>>, vector<8x128xf32>
    %cst = arith.constant dense<0.000000e+00> : vector<8x128xf32>
    %2 = tpu.matmul %0, %1, %cst {dimension_numbers = #tpu.dot_dimension_numbers<[1], [0], [0], [1], [0, 0, 1, 1], [], []>} : vector<8x8xf32>, vector<8x128xf32>, vector<8x128xf32> -> vector<8x128xf32>
    %c0_3 = arith.constant 0 : index
    %c0_4 = arith.constant 0 : index
    %3 = vector.load %arg2[%c0_3, %c0_4] : memref<8x1xf32, #tpu.memory_space<vmem>>, vector<8x1xf32>
    %c0_5 = arith.constant 0 : index
    %c0_6 = arith.constant 0 : index
    %4 = vector.load %arg4[%c0_5, %c0_6] : memref<8x128xf32, #tpu.memory_space<vmem>>, vector<8x128xf32>
    %5 = vector.broadcast %3 : vector<8x1xf32> to vector<8x128xf32>
    %6 = arith.mulf %5, %4 : vector<8x128xf32>
    %cst_7 = arith.constant 1.000000e-01 : f32
    %7 = vector.broadcast %cst_7 : f32 to vector<8x128xf32>
    %8 = arith.mulf %7, %2 : vector<8x128xf32>
    %9 = arith.addf %6, %8 : vector<8x128xf32>
    %c0_8 = arith.constant 0 : index
    %c0_9 = arith.constant 0 : index
    %10 = vector.load %arg5[%c0_8, %c0_9] : memref<8x128xf32, #tpu.memory_space<vmem>>, vector<8x128xf32>
    tpu.vector_store %arg5[%c0_8, %c0_9], %9 {strides = array<i32>} : memref<8x128xf32, #tpu.memory_space<vmem>>, vector<8x128xf32>,
    return
  }
  func.func @transform_0(%arg0: i32) -> (i32, i32) {
    %c0_i32 = arith.constant 0 : i32
    %c0_i32_0 = arith.constant 0 : i32
    %c0_i32_1 = arith.constant 0 : i32
    return %c0_i32, %c0_i32_0 : i32, i32
  }
  func.func @transform_1(%arg0: i32) -> (i32, i32) {
    %c0_i32 = arith.constant 0 : i32
    %c0_i32_0 = arith.constant 0 : i32
    %c0_i32_1 = arith.constant 0 : i32
    return %c0_i32, %c0_i32_0 : i32, i32
  }
  func.func @transform_2(%arg0: i32) -> (i32, i32) {
    %c0_i32 = arith.constant 0 : i32
    %c0_i32_0 = arith.constant 0 : i32
    return %c0_i32, %arg0 : i32, i32
  }
  func.func @transform_3(%arg0: i32) -> (i32, i32) {
    %c0_i32 = arith.constant 0 : i32
    %c0_i32_0 = arith.constant 0 : i32
    return %c0_i32, %arg0 : i32, i32
  }
  func.func @transform_4(%arg0: i32) -> (i32, i32) {
    %c0_i32 = arith.constant 0 : i32
    %c0_i32_0 = arith.constant 0 : i32
    return %c0_i32, %arg0 : i32, i32
  }
}

</mosaic_0001>

<bundles_post_ra>
// kernel: proc_call.1
= control target key start
LH: loop header
LB: loop body
LE: loop exit
PB: predicated region body
PF: predicated region fallthrough
CT: control target
= control target key end

     0   :  { %9 = vsyncpa [#allocation3], 0  ;;  %s397_s0 = inlined_call_operand.hbm [shape: f32[8,8], index: 0, kind: input, shape index: {}]   ;;  %s398_s1 = inlined_call_operand.hbm [shape: f32[8,1], index: 1, kind: input, shape index: {}]   ;;  %s399_s2 = inlined_call_operand.hbm [shape: f32[8,128], index: 2, kind: input, shape index: {}]   ;;  %s400_s3 = inlined_call_operand.hbm [shape: f32[8,128], index: 3, kind: input, shape index: {}, may-alias: {3,4}]   ;;  %s401_s4 = inlined_call_operand.hbm [shape: f32[8,128], index: 4, kind: output, shape index: {}, may-alias: {3,4}]  }
   0x1   :  { %10 = vsyncpa [#allocation6], 0 }
   0x2   :  { %11 = vsyncpa [#allocation9], 0 }
   0x3   :  { %12 = vsyncpa [#allocation4], 0  ;;  %s304_s15 = smov [#allocation5]   ;;  %s305_s17 = smov [#allocation2]  }
   0x4   :  { %s29_s16 = sshll.u32 %s304_s15, 4  ;;  %s19_s18 = sshll.u32 %s305_s17, 4  ;;  %s30_s16 = int_to_ptr.vmem [resolvable:$true] %s29_s16  ;;  %s20_s18 = int_to_ptr.vmem [resolvable:$true] %s19_s18 }
   0x5   :  { %s186_s21 = scalar_lea.hbm %s398_s1, 128 }
   0x6   :  { %p187_p0 = scmp.ne.s32.totalorder %s398_s1, %s186_s21  ;;  %p190_p1 = scmp.lt.u32.totalorder %s186_s21, %s398_s1 }
   0x8   :  { %p192_p2 = pnand %p190_p1, %p187_p0 }
   0xa   :  { %195 = shalt.err (!%p192_p2)
}
   0xb   :  { %s196_s26 = scalar_lea.vmem %s30_s16, 128  ;;  %p201_p4 = scmp.lt.s32.totalorder %s30_s16, %s30_s16 }
   0xc   :  { %p197_p3 = scmp.ne.s32.totalorder %s30_s16, %s196_s26  ;;  %p202_p5 = scmp.lt.s32.totalorder %s196_s26, %s196_s26 }
   0xe   :  { %p203_p6 = por %p202_p5, %p201_p4 }
  0x10   :  { %p204_p7 = pnand %p203_p6, %p197_p3 }
  0x12   :  { %207 = shalt.err (!%p204_p7)
}
  0x13   :  { %32 = dma.hbm_to_vmem [thread:$0]  %s398_s1, 128, %s30_s16, [#allocation6]  }
  0x14   :  { %s208_s5 = scalar_lea.hbm %s397_s0, 128 }
  0x15   :  { %p209_p8 = scmp.ne.s32.totalorder %s397_s0, %s208_s5  ;;  %p212_p9 = scmp.lt.u32.totalorder %s208_s5, %s397_s0 }
  0x17   :  { %p214_p10 = pnand %p212_p9, %p209_p8 }
  0x19   :  { %217 = shalt.err (!%p214_p10)
}
  0x1a   :  { %s218_s10 = scalar_lea.vmem %s20_s18, 128  ;;  %p223_p12 = scmp.lt.s32.totalorder %s20_s18, %s20_s18 }
  0x1b   :  { %p219_p11 = scmp.ne.s32.totalorder %s20_s18, %s218_s10  ;;  %p224_p13 = scmp.lt.s32.totalorder %s218_s10, %s218_s10 }
  0x1d   :  { %p225_p0 = por %p224_p13, %p223_p12 }
  0x1f   :  { %p226_p1 = pnand %p225_p0, %p219_p11 }
  0x21   :  { %229 = shalt.err (!%p226_p1)
}
  0x22   :  { %22 = dma.hbm_to_vmem [thread:$0]  %s397_s0, 128, %s20_s18, [#allocation3]  }
  0x23   :  { %s306_s12 = smov [#allocation7]   ;;  %s307_s14 = smov [#allocation8]  }
  0x24   :  { %s39_s13 = sshll.u32 %s306_s12, 4  ;;  %s49_s15 = sshll.u32 %s307_s14, 4  ;;  %s40_s13 = int_to_ptr.vmem [resolvable:$true] %s39_s13  ;;  %s50_s15 = int_to_ptr.vmem [resolvable:$true] %s49_s15 }
  0x25   :  { %s230_s19 = scalar_lea.hbm %s399_s2, 128 }
  0x26   :  { %p231_p2 = scmp.ne.s32.totalorder %s399_s2, %s230_s19  ;;  %p234_p3 = scmp.lt.u32.totalorder %s230_s19, %s399_s2 }
  0x28   :  { %p236_p4 = pnand %p234_p3, %p231_p2 }
  0x2a   :  { %239 = shalt.err (!%p236_p4)
}
  0x2b   :  { %s240_s0 = scalar_lea.vmem %s40_s13, 128  ;;  %p245_p6 = scmp.lt.s32.totalorder %s40_s13, %s40_s13 }
  0x2c   :  { %p241_p5 = scmp.ne.s32.totalorder %s40_s13, %s240_s0  ;;  %p246_p7 = scmp.lt.s32.totalorder %s240_s0, %s240_s0 }
  0x2e   :  { %p247_p8 = por %p246_p7, %p245_p6 }
  0x30   :  { %p248_p9 = pnand %p247_p8, %p241_p5 }
  0x32   :  { %251 = shalt.err (!%p248_p9)
}
  0x33   :  { %42 = dma.hbm_to_vmem [thread:$0]  %s399_s2, 128, %s40_s13, [#allocation6]  }
  0x34   :  { %s252_s27 = scalar_lea.hbm %s400_s3, 128 }
  0x35   :  { %p253_p10 = scmp.ne.s32.totalorder %s400_s3, %s252_s27  ;;  %p256_p11 = scmp.lt.u32.totalorder %s252_s27, %s400_s3 }
  0x37   :  { %p258_p12 = pnand %p256_p11, %p253_p10 }
  0x39   :  { %261 = shalt.err (!%p258_p12)
}
  0x3a   :  { %s262_s6 = scalar_lea.vmem %s50_s15, 128  ;;  %p267_p0 = scmp.lt.s32.totalorder %s50_s15, %s50_s15 }
  0x3b   :  { %p263_p13 = scmp.ne.s32.totalorder %s50_s15, %s262_s6  ;;  %p268_p1 = scmp.lt.s32.totalorder %s262_s6, %s262_s6 }
  0x3d   :  { %p269_p2 = por %p268_p1, %p267_p0 }
  0x3f   :  { %p270_p3 = pnand %p269_p2, %p263_p13 }
  0x41   :  { %273 = shalt.err (!%p270_p3)
}
  0x42   :  { %52 = dma.hbm_to_vmem [thread:$0]  %s400_s3, 128, %s50_s15, [#allocation9]  }
  0x43   :  { %296 = dma.done.wait [#allocation3], 128  }
  0x44   :  { %297 = vsyncadd [#allocation3], 4294967168 }
  0x45   :  { %298 = dma.done.wait [#allocation6], 256  }
  0x46   :  { %299 = vsyncadd [#allocation6], 4294967040 }
  0x47   :  { %300 = dma.done.wait [#allocation9], 128  }
  0x48   :  { %301 = vsyncadd [#allocation9], 4294967168  ;;  %v308_v0 = vmov 0.0   ;;  %vm309_vm0 = vmmov 0   ;;  %v310_v1 = vmov 0   ;;  %vm67_vm1 = vcmask 64512  }
  0x49   :  { %172 = vmatprep.subr.mxu0 %v308_v0  ;;  %174 = vmatprep.mubr.msk.f32.mxu0 %vm309_vm0, %v308_v0  ;;  %v66_v2 = vld [vmem:[#allocation7] sm:$0xff]  ;;  %v65_v3 = vld [vmem:[#allocation2] sm:$0xff]  ;;  %v141_v4 = vld [vmem:[#allocation5] sm:$0xff]  ;;  %s311_s3 = smov [#allocation10]  }
  0x4a   :  { %185 = vset.pattern.permute.xlu0 %v310_v1  ;;  %173 = vmatpush3.msra.mxu0 %v66_v2  ;;  %v142_v5 = vld [vmem:[#allocation8] sm:$0xff]  ;;  %s158_s8 = sshll.u32 %s311_s3, 4  ;;  %s159_s8 = int_to_ptr.vmem [resolvable:$true] %s158_s8 }
  0x4b   :  { %145 = vperm.xlu0 %185, %v141_v4   ;;  %175 = vmatmul.mubr.msk.f32.vlgmr.msra.gmra.mrb[0].mxu0 %vm67_vm1, %v65_v3  ;;  %s274_s9 = scalar_lea.vmem %s159_s8, 128  ;;  %p279_p5 = scmp.lt.s32.totalorder %s159_s8, %s159_s8 }
  0x4c   :  { %p275_p4 = scmp.ne.s32.totalorder %s159_s8, %s274_s9  ;;  %p280_p6 = scmp.lt.s32.totalorder %s274_s9, %s274_s9 }
  0x4e   :  { %p281_p7 = por %p280_p6, %p279_p5 }
  0x50   :  { %p282_p8 = pnand %p281_p7, %p275_p4 }
  0xca   :  { %v146_v6 = vpop.permute.xlu0 %145 }
  0xcb   :  { %v148_v7 = vmul.f32 %v146_v6, %v142_v5 }
 0x11e   :  { %v137_v8 = vpop.f32.mrb[0].mxu0 }
 0x11f   :  { %v149_v9 = vmul.f32 0.1, %v137_v8  ;;  %v176_v10 = vpop.f32.mrb[1].mxu0 }
 0x121   :  { %v150_v11 = vadd.f32 %v149_v9, %v148_v7 }
 0x123   :  { %151 = vst [vmem:[#allocation10] sm:$0xff] %v150_v11 }
 0x124   :  { %285 = shalt.err (!%p282_p8)
}
 0x125   :  { %s286_s11 = scalar_lea.hbm %s401_s4, 128 }
 0x126   :  { %p287_p9 = scmp.ne.s32.totalorder %s401_s4, %s286_s11  ;;  %p290_p10 = scmp.lt.u32.totalorder %s286_s11, %s401_s4 }
 0x128   :  { %p292_p11 = pnand %p290_p10, %p287_p9 }
 0x12a   :  { %295 = shalt.err (!%p292_p11)
}
 0x12b   :  { %161 = dma.vmem_to_hbm [thread:$0]  %s159_s8, 128, %s401_s4, [#allocation4]  }
 0x12c   :  { %302 = dma.done.wait [#allocation4], 128  }
 0x12d   :  { %303 = vsyncadd [#allocation4], 4294967168 }
 0x12e   :  { %165 = vsyncpa [#allocation3], 1 }
 0x12f   :  { %166 = vsyncpa [#allocation6], 1 }
 0x130   :  { %167 = vsyncpa [#allocation9], 1 }
 0x131   :  { %168 = vsyncpa [#allocation4], 1 }

</bundles_post_ra>
